<compile_context>
chip_gen: v7x
topology: tpu7x:2x2x1
jax: 0.10.0
libtpu: 0.0.40
codegen_flags: <defaults>
</compile_context>

<pallas_src>
import jax
import jax.numpy as jnp
from jax.experimental import pallas as pl
from jax.experimental.pallas import tpu as pltpu

_TC_TARGET = 2048   # tile along r = D0*D1 (output last/lane dim -> lane-dense stores)
_TR_TARGET = 512    # tile along c = D2    (output sublane dim)


def _transpose_tile_kernel(x_ref, o_ref):
    # x_ref: (TC, TR) input tile, o_ref: (TR, TC) output tile.
    # One fused XLU transpose per tile; output stores stay unmasked lane-dense.
    o_ref[...] = x_ref[...].T


def _pick_tile(dim, target):
    """Full dim when small (full-extent blocks skip the (8,128) rule); else the
    largest multiple of 128 <= target that divides `dim`; else `target`."""
    if dim <= target:
        return dim
    t = (target // 128) * 128
    while t >= 128:
        if dim % t == 0:
            return t
        t -= 128
    return (target // 128) * 128   # ragged edge: Pallas masks the last blocks


def non_redundant_permute(x):
    """z = transpose(x, (2, 0, 1)) via a tiled 2-D transpose kernel."""
    d0, d1, d2 = x.shape
    r, c = d0 * d1, d2                  # x_flat: (r, c)   z_flat: (c, r)
    x2 = x.reshape(r, c)                # free row-major view
    itemsize = jnp.dtype(x.dtype).itemsize

    t_c = _pick_tile(r, _TC_TARGET)     # output cols / lane dim  (along D0*D1)
    t_r = _pick_tile(c, _TR_TARGET)     # output rows             (along D2)

    # Keep the grid splittable across v7x's two TensorCores for non-tiny inputs.
    if pl.cdiv(c, t_r) * pl.cdiv(r, t_c) == 1 and r * c * itemsize > (2 << 20):
        if t_c >= t_r and t_c >= 256:
            t_c = max(128, ((t_c // 2) // 128) * 128)
        elif t_r >= 256:
            t_r = max(128, ((t_r // 2) // 128) * 128)

    grid = (pl.cdiv(c, t_r), pl.cdiv(r, t_c))
    n_steps = grid[0] * grid[1]

    # Input spec: 3-deep buffering when the pipeline is long enough to benefit
    # (the pipeline is pure DMA; compute per tile is one XLU transpose).
    in_idx = lambda i, j: (j, i)
    in_bufs = 2
    in_spec = pl.BlockSpec((t_c, t_r), in_idx)
    if n_steps >= 3:
        try:
            in_spec = pl.BlockSpec((t_c, t_r), in_idx,
                                   pipeline_mode=pl.Buffered(3))
            in_bufs = 3
        except TypeError:   # jax without pipeline_mode kwarg: keep default 2
            pass

    # Explicit scoped-VMEM budget: buffered in/out tiles + headroom. Avoids the
    # v5e 16 MiB default-limit OOM once tiles grow; capped under v7x physical.
    tile_bytes = t_c * t_r * itemsize
    vmem_bytes = int(min(max(tile_bytes * (in_bufs + 2) + (4 << 20), 16 << 20),
                         48 << 20))

    z_flat = pl.pallas_call(
        _transpose_tile_kernel,
        out_shape=jax.ShapeDtypeStruct((c, r), x.dtype),
        grid_spec=pltpu.PrefetchScalarGridSpec(
            num_scalar_prefetch=0,
            grid=grid,
            in_specs=[in_spec],
            out_specs=pl.BlockSpec((t_r, t_c), lambda i, j: (i, j)),
        ),
        compiler_params=pltpu.CompilerParams(
            dimension_semantics=("parallel", "parallel"),
            vmem_limit_bytes=vmem_bytes),
        cost_estimate=pl.CostEstimate(
            flops=0,
            transcendentals=0,
            bytes_accessed=2 * x.size * itemsize),
    )(x2)

    return z_flat.reshape(d2, d0, d1)   # free row-major view back to 3-D


def _reference(x):
    # Exact two-step permute from the PyTorch module.
    return jnp.transpose(jnp.transpose(x, (2, 1, 0)), (0, 2, 1))


if __name__ == "__main__":
    key = jax.random.PRNGKey(0)
    k0, k1, k2 = jax.random.split(key, 3)

    # 1) Canonical module example shape (2, 2, 2) -> full-dim single-tile path.
    x_tiny = jax.random.normal(k0, (2, 2, 2), dtype=jnp.float32)
    z_tiny = non_redundant_permute(x_tiny)
    jax.block_until_ready(z_tiny)
    assert z_tiny.shape == (2, 2, 2), z_tiny.shape
    assert z_tiny.dtype == x_tiny.dtype
    assert jnp.allclose(z_tiny, _reference(x_tiny)), "tiny-case mismatch"

    # 2) Small non-square 3-D input (still full-dim blocks).
    x_small = jax.random.normal(k1, (4, 8, 16), dtype=jnp.float32)
    z_small = non_redundant_permute(x_small)
    jax.block_until_ready(z_small)
    assert z_small.shape == (16, 4, 8), z_small.shape
    assert jnp.allclose(z_small, _reference(x_small)), "small-case mismatch"

    # 3) Moderate shape exercising the tiled grid path:
    #    flat = 2048 x 1024, tiles (t_c, t_r) = (2048, 512), grid = (2, 1).
    x_mid = jax.random.normal(k2, (8, 256, 1024), dtype=jnp.float32)
    z_mid = non_redundant_permute(x_mid)
    jax.block_until_ready(z_mid)
    assert z_mid.shape == (1024, 8, 256), z_mid.shape
    assert jnp.allclose(z_mid, _reference(x_mid)), "tiled-case mismatch"

    print("KERNEL_OK")
</pallas_src>

<mosaic_0001>
module attributes {stable_mosaic.version = 11 : i64} {
  func.func @_transpose_tile_kernel(%arg0: i32, %arg1: i32, %arg2: memref<4x2xf32, #tpu.memory_space<vmem>>, %arg3: memref<2x4xf32, #tpu.memory_space<vmem>>) attributes {dimension_semantics = [#tpu.dimension_semantics<parallel>, #tpu.dimension_semantics<parallel>], iteration_bounds = array<i64: 1, 1>, scalar_prefetch = 0 : i64, scratch_operands = 0 : i64, tpu.core_type = #tpu.core_type<tc>, window_params = [{transform_indices = @transform_0, window_bounds = array<i64: 4, 2>}, {transform_indices = @transform_1, window_bounds = array<i64: 2, 4>}]} {
    %c0 = arith.constant 0 : index
    %c0_0 = arith.constant 0 : index
    %0 = vector.load %arg2[%c0, %c0_0] : memref<4x2xf32, #tpu.memory_space<vmem>>, vector<4x2xf32>
    %1 = tpu.transpose %0, [1, 0] : vector<4x2xf32> -> vector<2x4xf32>
    %c0_1 = arith.constant 0 : index
    %c0_2 = arith.constant 0 : index
    %2 = vector.load %arg3[%c0_1, %c0_2] : memref<2x4xf32, #tpu.memory_space<vmem>>, vector<2x4xf32>
    tpu.vector_store %arg3[%c0_1, %c0_2], %1 {strides = array<i32>} : memref<2x4xf32, #tpu.memory_space<vmem>>, vector<2x4xf32>,
    return
  }
  func.func @transform_0(%arg0: i32, %arg1: i32) -> (i32, i32) {
    %c0_i32 = arith.constant 0 : i32
    return %arg1, %arg0 : i32, i32
  }
  func.func @transform_1(%arg0: i32, %arg1: i32) -> (i32, i32) {
    %c0_i32 = arith.constant 0 : i32
    return %arg0, %arg1 : i32, i32
  }
}

</mosaic_0001>

<bundles_post_ra>
// kernel: tpu_custom_call.1
= control target key start
LH: loop header
LB: loop body
LE: loop exit
PB: predicated region body
PF: predicated region fallthrough
CT: control target
= control target key end

     0   :  { %s110_s0 = inlined_call_operand.vmem [shape: f32[4,2], index: 0, kind: input, shape index: {}]   ;;  %s111_s1 = inlined_call_operand.hbm [shape: f32[2,4], index: 1, kind: output, shape index: {}]  }
   0x1   :  { %v9_v0 = vld [vmem:[%s110_s0] sm:$0xf] }
   0x2   :  { %6 = vsyncpa [#allocation3], 0  ;;  %10 = vxpose.xlu0.b32.start.end [1/1] (short) (narrow) %v9_v0, 8  ;;  %s84_s8 = smov [#allocation2]   ;;  %vm42_vm0 = vcmask 25600  }
   0x3   :  { %s50_s9 = sshll.u32 %s84_s8, 4  ;;  %s51_s9 = int_to_ptr.vmem [resolvable:$true] %s50_s9 }
   0x4   :  { %s60_s10 = scalar_lea.vmem %s51_s9, 32  ;;  %p65_p1 = scmp.lt.s32.totalorder %s51_s9, %s51_s9 }
   0x5   :  { %p61_p0 = scmp.ne.s32.totalorder %s51_s9, %s60_s10  ;;  %p66_p2 = scmp.lt.s32.totalorder %s60_s10, %s60_s10 }
   0x7   :  { %p67_p3 = por %p66_p2, %p65_p1 }
   0x9   :  { %p68_p4 = pnand %p67_p3, %p61_p0 }
  0x82   :  { %v26_v1 = vpop.trf.xlu0 }
  0x83   :  { %43 = vst.msk [vmem:[#allocation2] sm:$0x3] %vm42_vm0, %v26_v1 }
  0x84   :  { %71 = shalt.err (!%p68_p4)
}
  0x85   :  { %s72_s13 = scalar_lea.hbm %s111_s1, 32 }
  0x86   :  { %p73_p5 = scmp.ne.s32.totalorder %s111_s1, %s72_s13  ;;  %p76_p6 = scmp.lt.u32.totalorder %s72_s13, %s111_s1 }
  0x88   :  { %p78_p7 = pnand %p76_p6, %p73_p5 }
  0x8a   :  { %81 = shalt.err (!%p78_p7)
}
  0x8b   :  { %53 = dma.vmem_to_hbm [thread:$0]  %s51_s9, 32, %s111_s1, [#allocation3]  }
  0x8c   :  { %82 = dma.done.wait [#allocation3], 32  }
  0x8d   :  { %83 = vsyncadd [#allocation3], 4294967264 }
  0x8e   :  { %57 = vsyncpa [#allocation3], 1 }

</bundles_post_ra>
